<compile_context>
chip_gen: v6e
topology: v6e:2x2x1
jax: 0.10.0
libtpu: 0.0.40
codegen_flags: <defaults>
</compile_context>

<pallas_src>
import jax
import jax.numpy as jnp
from jax.experimental import pallas as pl
from jax.experimental.pallas import tpu as pltpu


# ----------------------------------------------------------------------------
# Fused kernel: runs one full HNHN layer per grid step, carrying x_0 in VMEM.
# Refs:
#   bt_ref : (n_edges, n_nodes)  bf16  normalized incidence transpose (B_T_norm)
#   bn_ref : (n_nodes, n_edges)  bf16  normalized incidence           (B_norm)
#   x0_ref : (n_nodes, C)        f32   padded input node features
#   w0_ref : (1, C, C)           bf16  W_0to1 of current layer
#   b0_ref : (1, 1, C)           f32   bias_0to1 of current layer
#   w1_ref : (1, C, C)           bf16  W_1to0 of current layer
#   b1_ref : (1, 1, C)           f32   bias_1to0 of current layer
# Outputs (VMEM-resident across the grid, written back once at the end):
#   x0_out_ref : (n_nodes, C) f32
#   x1_out_ref : (n_edges, C) f32
# Scratch:
#   x0_sc : (n_nodes, C) f32   node-feature carry between layers
# ----------------------------------------------------------------------------
def _hnhn_stack_kernel(bt_ref, bn_ref, x0_ref, w0_ref, b0_ref, w1_ref, b1_ref,
                       x0_out_ref, x1_out_ref, x0_sc):
    layer = pl.program_id(0)
    n_layers = pl.num_programs(0)

    @pl.when(layer == 0)
    def _():
        x0_sc[...] = x0_ref[...]

    # ---- node -> edge:  x_1 = relu(B_T_norm @ (x_0 @ W_0to1) + b_0to1) ----
    x0_bf = x0_sc[...].astype(jnp.bfloat16)
    xw = jnp.dot(x0_bf, w0_ref[0], preferred_element_type=jnp.float32)        # MXU
    x1 = jnp.dot(bt_ref[...], xw.astype(jnp.bfloat16),
                 preferred_element_type=jnp.float32)                          # MXU
    x1 = jnp.maximum(x1 + b0_ref[0], 0.0)                                     # VPU (f32)

    # ---- edge -> node:  x_0 = relu(B_norm @ (x_1 @ W_1to0) + b_1to0) ----
    x1w = jnp.dot(x1.astype(jnp.bfloat16), w1_ref[0],
                  preferred_element_type=jnp.float32)                         # MXU
    x0_new = jnp.dot(bn_ref[...], x1w.astype(jnp.bfloat16),
                     preferred_element_type=jnp.float32)                      # MXU
    x0_new = jnp.maximum(x0_new + b1_ref[0], 0.0)                             # VPU (f32)

    x0_sc[...] = x0_new

    @pl.when(layer == n_layers - 1)
    def _():
        x0_out_ref[...] = x0_new.astype(x0_out_ref.dtype)
        x1_out_ref[...] = x1.astype(x1_out_ref.dtype)


# ----------------------------------------------------------------------------
# Incidence normalization (data-independent preprocessing, plain JAX glue).
# ----------------------------------------------------------------------------
def normalize_incidence(incidence_1, alpha=-1.5, beta=-0.5):
    B1 = incidence_1.astype(jnp.float32)
    edge_cardinality = jnp.sum(B1, axis=0) ** alpha     # (n_edges,)
    node_cardinality = jnp.sum(B1, axis=1) ** beta      # (n_nodes,)

    d0_left_alpha_inv = 1.0 / (B1 @ edge_cardinality)   # (n_nodes,)
    d1_left_beta_inv = 1.0 / (B1.T @ node_cardinality)  # (n_edges,)

    b_norm = d0_left_alpha_inv[:, None] * B1 * edge_cardinality[None, :]
    bt_norm = d1_left_beta_inv[:, None] * B1.T * node_cardinality[None, :]
    return b_norm, bt_norm


# ----------------------------------------------------------------------------
# HNHN forward: one fused pallas_call over all layers.
# ----------------------------------------------------------------------------
def hnhn_forward(x_0, b_norm, bt_norm, layer_params):
    n_nodes, n_edges = b_norm.shape
    n_layers = len(layer_params)
    in_ch = x_0.shape[1]
    hidden = layer_params[0][0].shape[1]

    # Pad channel dims to a lane-dense multiple of 128.
    C = 128 * pl.cdiv(max(in_ch, hidden), 128)

    def pad_w(w):
        return jnp.pad(w.astype(jnp.float32),
                       ((0, C - w.shape[0]), (0, C - w.shape[1])))

    def pad_b(b):
        return jnp.pad(b.astype(jnp.float32), ((0, 0), (0, C - b.shape[1])))

    # Stack per-layer params: indexed by the layer grid axis inside the kernel.
    w0_all = jnp.stack([pad_w(p[0]) for p in layer_params]).astype(jnp.bfloat16)
    b0_all = jnp.stack([pad_b(p[1]) for p in layer_params])
    w1_all = jnp.stack([pad_w(p[2]) for p in layer_params]).astype(jnp.bfloat16)
    b1_all = jnp.stack([pad_b(p[3]) for p in layer_params])

    x0_pad = jnp.pad(x_0.astype(jnp.float32), ((0, 0), (0, C - in_ch)))
    bt_bf = bt_norm.astype(jnp.bfloat16)
    bn_bf = b_norm.astype(jnp.bfloat16)

    grid_spec = pltpu.PrefetchScalarGridSpec(
        num_scalar_prefetch=0,
        grid=(n_layers,),
        in_specs=[
            pl.BlockSpec((n_edges, n_nodes), lambda l: (0, 0)),   # B_T_norm
            pl.BlockSpec((n_nodes, n_edges), lambda l: (0, 0)),   # B_norm
            pl.BlockSpec((n_nodes, C), lambda l: (0, 0)),         # x_0 (padded)
            pl.BlockSpec((1, C, C), lambda l: (l, 0, 0)),         # W_0to1[l]
            pl.BlockSpec((1, 1, C), lambda l: (l, 0, 0)),         # b_0to1[l]
            pl.BlockSpec((1, C, C), lambda l: (l, 0, 0)),         # W_1to0[l]
            pl.BlockSpec((1, 1, C), lambda l: (l, 0, 0)),         # b_1to0[l]
        ],
        out_specs=[
            pl.BlockSpec((n_nodes, C), lambda l: (0, 0)),         # x_0 out
            pl.BlockSpec((n_edges, C), lambda l: (0, 0)),         # x_1 out
        ],
        scratch_shapes=[pltpu.VMEM((n_nodes, C), jnp.float32)],   # x_0 carry
    )

    x0_out, x1_out = pl.pallas_call(
        _hnhn_stack_kernel,
        out_shape=(
            jax.ShapeDtypeStruct((n_nodes, C), jnp.float32),
            jax.ShapeDtypeStruct((n_edges, C), jnp.float32),
        ),
        grid_spec=grid_spec,
        compiler_params=pltpu.CompilerParams(
            dimension_semantics=("arbitrary",),   # layers are sequential (carry)
        ),
    )(bt_bf, bn_bf, x0_pad, w0_all, b0_all, w1_all, b1_all)

    # Drop the zero padding.
    return x0_out[:, :hidden], x1_out[:, :hidden]


# ----------------------------------------------------------------------------
# Deterministic parameter init (xavier-uniform-like, synthetic — no checkpoint)
# ----------------------------------------------------------------------------
def xavier_uniform(key, shape, gain=1.414):
    fan_in, fan_out = shape[0], shape[1]
    limit = gain * jnp.sqrt(6.0 / (fan_in + fan_out))
    return jax.random.uniform(key, shape, jnp.float32, -limit, limit)


def init_params(key, in_channels, hidden_channels, n_layers=2):
    params = []
    dims = [in_channels] + [hidden_channels] * n_layers
    for layer_idx in range(n_layers):
        key, k1, k2, k3, k4 = jax.random.split(key, 5)
        d_in = dims[layer_idx]
        w_0to1 = xavier_uniform(k1, (d_in, hidden_channels))
        b_0to1 = xavier_uniform(k2, (1, hidden_channels))
        w_1to0 = xavier_uniform(k3, (hidden_channels, hidden_channels))
        b_1to0 = xavier_uniform(k4, (1, hidden_channels))
        params.append((w_0to1, b_0to1, w_1to0, b_1to0))
    return params


if __name__ == "__main__":
    key = jax.random.PRNGKey(0)

    n_nodes, n_edges = 16, 8
    in_channels, hidden_channels, n_layers = 4, 32, 2

    # Deterministic incidence matrix; guarantee no empty node rows / edge columns
    # so the HNHN normalization (negative powers of cardinalities) is well defined.
    key, k_inc, k_x = jax.random.split(key, 3)
    inc = (jax.random.uniform(k_inc, (n_nodes, n_edges)) < 0.35).astype(jnp.float32)
    rows = jnp.arange(n_nodes)
    cols = jnp.arange(n_edges)
    inc = inc.at[rows, rows % n_edges].set(1.0)   # every node in >=1 edge
    inc = inc.at[cols % n_nodes, cols].set(1.0)   # every edge has >=1 node

    x_0 = jax.random.normal(k_x, (n_nodes, in_channels), jnp.float32)

    b_norm, bt_norm = normalize_incidence(inc)
    layer_params = init_params(key, in_channels, hidden_channels, n_layers)

    x0_out, x1_out = hnhn_forward(x_0, b_norm, bt_norm, layer_params)
    jax.block_until_ready((x0_out, x1_out))

    assert x0_out.shape == (n_nodes, hidden_channels)
    assert x1_out.shape == (n_edges, hidden_channels)
    print("KERNEL_OK")
</pallas_src>

<mosaic_0001>
module attributes {stable_mosaic.version = 11 : i64} {
  func.func @_hnhn_stack_kernel(%arg0: i32, %arg1: memref<8x16xbf16, #tpu.memory_space<vmem>>, %arg2: memref<16x8xbf16, #tpu.memory_space<vmem>>, %arg3: memref<16x128xf32, #tpu.memory_space<vmem>>, %arg4: memref<1x128x128xbf16, #tpu.memory_space<vmem>>, %arg5: memref<1x1x128xf32, #tpu.memory_space<vmem>>, %arg6: memref<1x128x128xbf16, #tpu.memory_space<vmem>>, %arg7: memref<1x1x128xf32, #tpu.memory_space<vmem>>, %arg8: memref<16x128xf32, #tpu.memory_space<vmem>>, %arg9: memref<8x128xf32, #tpu.memory_space<vmem>>, %arg10: memref<16x128xf32, #tpu.memory_space<vmem>>) attributes {dimension_semantics = [#tpu.dimension_semantics<arbitrary>], iteration_bounds = array<i64: 2>, scalar_prefetch = 0 : i64, scratch_operands = 1 : i64, tpu.core_type = #tpu.core_type<tc>, window_params = [{pipeline_mode = #tpu.pipeline_mode<synchronous>, transform_indices = @transform_0, window_bounds = array<i64: 8, 16>}, {pipeline_mode = #tpu.pipeline_mode<synchronous>, transform_indices = @transform_1, window_bounds = array<i64: 16, 8>}, {pipeline_mode = #tpu.pipeline_mode<synchronous>, transform_indices = @transform_2, window_bounds = array<i64: 16, 128>}, {transform_indices = @transform_3, window_bounds = array<i64: 1, 128, 128>}, {transform_indices = @transform_4, window_bounds = array<i64: 1, 1, 128>}, {transform_indices = @transform_5, window_bounds = array<i64: 1, 128, 128>}, {transform_indices = @transform_6, window_bounds = array<i64: 1, 1, 128>}, {pipeline_mode = #tpu.pipeline_mode<synchronous>, transform_indices = @transform_7, window_bounds = array<i64: 16, 128>}, {pipeline_mode = #tpu.pipeline_mode<synchronous>, transform_indices = @transform_8, window_bounds = array<i64: 8, 128>}]} {
    %c0_i32 = arith.constant 0 : i32
    %0 = arith.cmpi eq, %arg0, %c0_i32 : i32
    %1 = arith.extui %0 : i1 to i32
    %c0_i32_0 = arith.constant 0 : i32
    %2 = arith.cmpi ne, %1, %c0_i32_0 : i32
    scf.if %2 {
      %c0_26 = arith.constant 0 : index
      %c0_27 = arith.constant 0 : index
      %34 = vector.load %arg3[%c0_26, %c0_27] : memref<16x128xf32, #tpu.memory_space<vmem>>, vector<16x128xf32>
      %c0_28 = arith.constant 0 : index
      %c0_29 = arith.constant 0 : index
      %35 = vector.load %arg10[%c0_28, %c0_29] : memref<16x128xf32, #tpu.memory_space<vmem>>, vector<16x128xf32>
      tpu.vector_store %arg10[%c0_28, %c0_29], %34 {strides = array<i32>} : memref<16x128xf32, #tpu.memory_space<vmem>>, vector<16x128xf32>,
    } else {
    }
    %c0 = arith.constant 0 : index
    %c0_1 = arith.constant 0 : index
    %3 = vector.load %arg10[%c0, %c0_1] : memref<16x128xf32, #tpu.memory_space<vmem>>, vector<16x128xf32>
    %4 = arith.truncf %3 : vector<16x128xf32> to vector<16x128xbf16>
    %c0_2 = arith.constant 0 : index
    %c0_3 = arith.constant 0 : index
    %c0_4 = arith.constant 0 : index
    %5 = vector.load %arg4[%c0_2, %c0_3, %c0_4] : memref<1x128x128xbf16, #tpu.memory_space<vmem>>, vector<1x128x128xbf16>
    %6 = vector.shape_cast %5 : vector<1x128x128xbf16> to vector<128x128xbf16>
    %cst = arith.constant dense<0.000000e+00> : vector<16x128xf32>
    %7 = tpu.matmul %4, %6, %cst {dimension_numbers = #tpu.dot_dimension_numbers<[1], [0], [0], [1], [0, 0, 1, 1], [], []>} : vector<16x128xbf16>, vector<128x128xbf16>, vector<16x128xf32> -> vector<16x128xf32>
    %c0_5 = arith.constant 0 : index
    %c0_6 = arith.constant 0 : index
    %8 = vector.load %arg1[%c0_5, %c0_6] : memref<8x16xbf16, #tpu.memory_space<vmem>>, vector<8x16xbf16>
    %9 = arith.truncf %7 : vector<16x128xf32> to vector<16x128xbf16>
    %cst_7 = arith.constant dense<0.000000e+00> : vector<8x128xf32>
    %10 = tpu.matmul %8, %9, %cst_7 {dimension_numbers = #tpu.dot_dimension_numbers<[1], [0], [0], [1], [0, 0, 1, 1], [], []>} : vector<8x16xbf16>, vector<16x128xbf16>, vector<8x128xf32> -> vector<8x128xf32>
    %c0_8 = arith.constant 0 : index
    %c0_9 = arith.constant 0 : index
    %c0_10 = arith.constant 0 : index
    %11 = vector.load %arg5[%c0_8, %c0_9, %c0_10] : memref<1x1x128xf32, #tpu.memory_space<vmem>>, vector<1x1x128xf32>
    %12 = vector.shape_cast %11 : vector<1x1x128xf32> to vector<1x128xf32>
    %13 = vector.broadcast %12 : vector<1x128xf32> to vector<8x128xf32>
    %14 = arith.addf %10, %13 : vector<8x128xf32>
    %cst_11 = arith.constant 0.000000e+00 : f32
    %15 = vector.broadcast %cst_11 : f32 to vector<8x128xf32>
    %16 = arith.maximumf %14, %15 : vector<8x128xf32>
    %17 = arith.truncf %16 : vector<8x128xf32> to vector<8x128xbf16>
    %c0_12 = arith.constant 0 : index
    %c0_13 = arith.constant 0 : index
    %c0_14 = arith.constant 0 : index
    %18 = vector.load %arg6[%c0_12, %c0_13, %c0_14] : memref<1x128x128xbf16, #tpu.memory_space<vmem>>, vector<1x128x128xbf16>
    %19 = vector.shape_cast %18 : vector<1x128x128xbf16> to vector<128x128xbf16>
    %cst_15 = arith.constant dense<0.000000e+00> : vector<8x128xf32>
    %20 = tpu.matmul %17, %19, %cst_15 {dimension_numbers = #tpu.dot_dimension_numbers<[1], [0], [0], [1], [0, 0, 1, 1], [], []>} : vector<8x128xbf16>, vector<128x128xbf16>, vector<8x128xf32> -> vector<8x128xf32>
    %c0_16 = arith.constant 0 : index
    %c0_17 = arith.constant 0 : index
    %21 = vector.load %arg2[%c0_16, %c0_17] : memref<16x8xbf16, #tpu.memory_space<vmem>>, vector<16x8xbf16>
    %22 = arith.truncf %20 : vector<8x128xf32> to vector<8x128xbf16>
    %cst_18 = arith.constant dense<0.000000e+00> : vector<16x128xf32>
    %23 = tpu.matmul %21, %22, %cst_18 {dimension_numbers = #tpu.dot_dimension_numbers<[1], [0], [0], [1], [0, 0, 1, 1], [], []>} : vector<16x8xbf16>, vector<8x128xbf16>, vector<16x128xf32> -> vector<16x128xf32>
    %c0_19 = arith.constant 0 : index
    %c0_20 = arith.constant 0 : index
    %c0_21 = arith.constant 0 : index
    %24 = vector.load %arg7[%c0_19, %c0_20, %c0_21] : memref<1x1x128xf32, #tpu.memory_space<vmem>>, vector<1x1x128xf32>
    %25 = vector.shape_cast %24 : vector<1x1x128xf32> to vector<1x128xf32>
    %26 = vector.broadcast %25 : vector<1x128xf32> to vector<16x128xf32>
    %27 = arith.addf %23, %26 : vector<16x128xf32>
    %cst_22 = arith.constant 0.000000e+00 : f32
    %28 = vector.broadcast %cst_22 : f32 to vector<16x128xf32>
    %29 = arith.maximumf %27, %28 : vector<16x128xf32>
    %c0_23 = arith.constant 0 : index
    %c0_24 = arith.constant 0 : index
    %30 = vector.load %arg10[%c0_23, %c0_24] : memref<16x128xf32, #tpu.memory_space<vmem>>, vector<16x128xf32>
    tpu.vector_store %arg10[%c0_23, %c0_24], %29 {strides = array<i32>} : memref<16x128xf32, #tpu.memory_space<vmem>>, vector<16x128xf32>,
    %c1_i32 = arith.constant 1 : i32
    %31 = arith.cmpi eq, %arg0, %c1_i32 : i32
    %32 = arith.extui %31 : i1 to i32
    %c0_i32_25 = arith.constant 0 : i32
    %33 = arith.cmpi ne, %32, %c0_i32_25 : i32
    scf.if %33 {
      %c0_26 = arith.constant 0 : index
      %c0_27 = arith.constant 0 : index
      %34 = vector.load %arg8[%c0_26, %c0_27] : memref<16x128xf32, #tpu.memory_space<vmem>>, vector<16x128xf32>
      tpu.vector_store %arg8[%c0_26, %c0_27], %29 {strides = array<i32>} : memref<16x128xf32, #tpu.memory_space<vmem>>, vector<16x128xf32>,
      %c0_28 = arith.constant 0 : index
      %c0_29 = arith.constant 0 : index
      %35 = vector.load %arg9[%c0_28, %c0_29] : memref<8x128xf32, #tpu.memory_space<vmem>>, vector<8x128xf32>
      tpu.vector_store %arg9[%c0_28, %c0_29], %16 {strides = array<i32>} : memref<8x128xf32, #tpu.memory_space<vmem>>, vector<8x128xf32>,
    } else {
    }
    return
  }
  func.func @transform_0(%arg0: i32) -> (i32, i32) {
    %c0_i32 = arith.constant 0 : i32
    %c0_i32_0 = arith.constant 0 : i32
    %c0_i32_1 = arith.constant 0 : i32
    return %c0_i32, %c0_i32_0 : i32, i32
  }
  func.func @transform_1(%arg0: i32) -> (i32, i32) {
    %c0_i32 = arith.constant 0 : i32
    %c0_i32_0 = arith.constant 0 : i32
    %c0_i32_1 = arith.constant 0 : i32
    return %c0_i32, %c0_i32_0 : i32, i32
  }
  func.func @transform_2(%arg0: i32) -> (i32, i32) {
    %c0_i32 = arith.constant 0 : i32
    %c0_i32_0 = arith.constant 0 : i32
    %c0_i32_1 = arith.constant 0 : i32
    return %c0_i32, %c0_i32_0 : i32, i32
  }
  func.func @transform_3(%arg0: i32) -> (i32, i32, i32) {
    %c0_i32 = arith.constant 0 : i32
    %c0_i32_0 = arith.constant 0 : i32
    %c0_i32_1 = arith.constant 0 : i32
    return %arg0, %c0_i32, %c0_i32_0 : i32, i32, i32
  }
  func.func @transform_4(%arg0: i32) -> (i32, i32, i32) {
    %c0_i32 = arith.constant 0 : i32
    %c0_i32_0 = arith.constant 0 : i32
    %c0_i32_1 = arith.constant 0 : i32
    return %arg0, %c0_i32, %c0_i32_0 : i32, i32, i32
  }
  func.func @transform_5(%arg0: i32) -> (i32, i32, i32) {
    %c0_i32 = arith.constant 0 : i32
    %c0_i32_0 = arith.constant 0 : i32
    %c0_i32_1 = arith.constant 0 : i32
    return %arg0, %c0_i32, %c0_i32_0 : i32, i32, i32
  }
  func.func @transform_6(%arg0: i32) -> (i32, i32, i32) {
    %c0_i32 = arith.constant 0 : i32
    %c0_i32_0 = arith.constant 0 : i32
    %c0_i32_1 = arith.constant 0 : i32
    return %arg0, %c0_i32, %c0_i32_0 : i32, i32, i32
  }
  func.func @transform_7(%arg0: i32) -> (i32, i32) {
    %c0_i32 = arith.constant 0 : i32
    %c0_i32_0 = arith.constant 0 : i32
    %c0_i32_1 = arith.constant 0 : i32
    return %c0_i32, %c0_i32_0 : i32, i32
  }
  func.func @transform_8(%arg0: i32) -> (i32, i32) {
    %c0_i32 = arith.constant 0 : i32
    %c0_i32_0 = arith.constant 0 : i32
    %c0_i32_1 = arith.constant 0 : i32
    return %c0_i32, %c0_i32_0 : i32, i32
  }
}

</mosaic_0001>

<bundles_post_ra>
// kernel: tpu_custom_call.1
= control target key start
LH: loop header
LB: loop body
LE: loop exit
PB: predicated region body
PF: predicated region fallthrough
CT: control target
= control target key end

     0   :  { %14 = vsyncpa [#allocation4], 0  ;;  %s1601_s0 = inlined_call_operand.vmem [shape: bf16[8,16], index: 0, kind: input, shape index: {}]   ;;  %s1602_s1 = inlined_call_operand.vmem [shape: bf16[16,8], index: 1, kind: input, shape index: {}]   ;;  %s1603_s2 = inlined_call_operand.hbm [shape: f32[16,128], index: 2, kind: input, shape index: {}]   ;;  %s1604_s3 = inlined_call_operand.hbm [shape: bf16[2,128,128], index: 3, kind: input, shape index: {}]   ;;  %s1605_s4 = inlined_call_operand.vmem [shape: f32[2,1,128], index: 4, kind: input, shape index: {}]   ;;  %s1606_s5 = inlined_call_operand.hbm [shape: bf16[2,128,128], index: 5, kind: input, shape index: {}]   ;;  %s1607_s6 = inlined_call_operand.vmem [shape: f32[2,1,128], index: 6, kind: input, shape index: {}]   ;;  %s1608_s7 = inlined_call_operand.hbm [shape: f32[16,128], index: 7, kind: output, shape index: {0}]   ;;  %s1609_s8 = inlined_call_operand.hbm [shape: f32[8,128], index: 8, kind: output, shape index: {1}]  }
   0x1   :  { %15 = vsyncpa [#allocation7], 0 }
   0x2   :  { %17 = vsyncpa [#allocation7 + $0x1], 0 }
   0x3   :  { %18 = vsyncpa [#allocation5], 0 }
   0x4   :  { %19 = vsyncpa [#allocation11], 0  ;;  %s1322_s27 = smov 0   ;;  %s1324_s28 = smov 0  }
   0x5   :  { %s1326_s29 = smov 0   ;;  %s1328_s30 = smov 0  }
   0x6 LB: > { %s1343_s9 = sadd.s32 1, %s1262_s30   ;;  %s95_s10 = sadd.s32 1, %s1258_s29  ;;  %s1262_s30 = sphi %s1328_s30, %s1624_s30   ;;  %s1258_s29 = sphi %s1326_s29, %s1623_s29   ;;  %s1254_s28 = sphi %s1324_s28, %s1622_s28   ;;  %s1250_s27 = sphi %s1322_s27, %s1621_s27  }
   0x7   : > { %s92_s11 = ssub.s32 %s1262_s30, %s1343_s9  ;;  %p102_p0 = scmp.ne.s32.totalorder %s1258_s29, %s1254_s28 }
   0x8   : > { %p93_p1 = scmp.eq.s32.totalorder %s92_s11, 0  ;;  %p103_p2 = scmp.eq.s32.totalorder %s1262_s30, 0 }
   0x9   : > { %p1020_p3 = scmp.lt.s32.totalorder %s1262_s30, 2  ;;  %s271_s13 = sand.u32 1, %s1262_s30  }
   0xa   : > { %s1353_s12 = scalar_select %p93_p1, %s1258_s29, %s95_s10  }
   0xb   : > { %p104_p4 = por %p103_p2, %p102_p0  ;;  %s273_s14 = sand.u32 1, %s1258_s29  }
   0xc   : > { %s1357_s15 = sshll.u32 %s273_s14, 6  ;;  %s916_s16 = sshll.u32 %s1262_s30, 10 }
   0xd   : > { %s1365_s19 = scalar_lea.hbm %s1604_s3, %s916_s16  ;;  %s275_s20 = scalar_lea.vmem [#allocation6], %s1357_s15 }
   0xe   : > { %s282_s21 = sshll.u32 %s275_s20, 4  ;;  %p1368_p5 = pnand %p1020_p3, %p104_p4  ;;  %s1372_s21 = int_to_ptr.vmem [resolvable:$true] %s282_s21 }
   0xf   : > { %s1374_s23 = scalar_lea.sflag [#allocation7], %s271_s13  ;;  %s1086_s24 = scalar_lea.hbm %s1365_s19, 1024 }
  0x10   : > { %p1087_p6 = scmp.ne.s32.totalorder %s1365_s19, %s1086_s24  ;;  %p1088_p7 = pneg %p1368_p5 }
  0x11   : > { %s1091_s10 = scalar_lea.hbm %s1604_s3, 2048  ;;  %p1092_p10 = scmp.lt.s32.totalorder %s1365_s19, %s1604_s3 }
  0x12   : > { %p1089_p8 = pnand %p1088_p7, %p1087_p6  ;;  %p1093_p11 = scmp.lt.s32.totalorder %s1091_s10, %s1086_s24 }
  0x14   : > { %p1090_p9 = pneg %p1089_p8  ;;  %p1094_p12 = por %p1093_p11, %p1092_p10 }
  0x16   : > { %p1095_p13 = pnand %p1094_p12, %p1090_p9 }
  0x18   : > { %1098 = shalt.err (!%p1095_p13)
}
  0x19   : > { %s1099_s13 = scalar_lea.vmem %s1372_s21, 1024  ;;  %s1264_s17 = smov [#allocation6]  }
  0x1a   : > { %p1100_p0 = scmp.ne.s32.totalorder %s1372_s21, %s1099_s13  ;;  %s1104_s18 = sshll.u32 %s1264_s17, 4  ;;  %s1105_s18 = int_to_ptr.vmem [resolvable:$false] %s1104_s18 }
  0x1b   : > { %s1106_s20 = scalar_lea.vmem %s1105_s18, 2048  ;;  %p1107_p3 = scmp.lt.s32.totalorder %s1372_s21, %s1105_s18 }
  0x1c   : > { %p1102_p1 = pnand %p1100_p0, %p1088_p7  ;;  %p1108_p4 = scmp.lt.s32.totalorder %s1106_s20, %s1099_s13 }
  0x1e   : > { %p1103_p2 = pneg %p1102_p1  ;;  %p1109_p6 = por %p1108_p4, %p1107_p3 }
  0x20   : > { %p1110_p8 = pnand %p1109_p6, %p1103_p2 }
  0x22   : > { %1113 = shalt.err (!%p1110_p8)
}
  0x23   : > { %s1265_s24 = smov 64   ;;  %s1266_s25 = smov 4  }
  0x24   : > { %1015 = dma.hbm_to_vmem [thread:$0]  (!%p1368_p5), %s1365_s19, 1024, %s1372_s21, %s1374_s23, %s1265_s24, %s1265_s24, %s1266_s25  }
  0x25   : > { %s1409_s11 = scalar_lea.hbm %s1606_s5, %s916_s16  ;;  %s302_s14 = scalar_lea.vmem [#allocation8], %s1357_s15 }
  0x26   : > { %s309_s13 = sshll.u32 %s302_s14, 4  ;;  %s1415_s17 = sadd.s32 4294967295, %s1262_s30   ;;  %s1412_s13 = int_to_ptr.vmem [resolvable:$true] %s309_s13 }
  0x27   : > { %p108_p9 = scmp.ne.s32.totalorder %s1254_s28, %s1250_s27  ;;  %p1610_p10 = scmp.eq.s32.totalorder %s1415_s17, 0 }
  0x28   : > { %p874_p11 = scmp.ge.s32.totalorder %s1262_s30, 1  ;;  %p239_p12 = scmp.lt.s32.totalorder %s1262_s30, 3 }
  0x29   : > { %p1425_p0 = por %p1610_p10, %p108_p9  ;;  %s1267_s19 = smov [#allocation3]  }
  0x2a   : > { %p1429_p1 = pnand %p874_p11, %p239_p12  ;;  %s257_s21 = sshll.u32 %s1267_s19, 4  ;;  %s1433_s21 = int_to_ptr.vmem [resolvable:$true] %s257_s21 }
  0x2b   : > { %s1613_s16 = scalar_select %p1425_p0, 1, 0 }
  0x2c   : > { %s1114_s27 = scalar_lea.hbm %s1409_s11, 1024  ;;  %s1119_s20 = scalar_lea.hbm %s1606_s5, 2048 }
  0x2d   : > { %p1115_p3 = scmp.ne.s32.totalorder %s1409_s11, %s1114_s27  ;;  %p1120_p8 = scmp.lt.s32.totalorder %s1409_s11, %s1606_s5 }
  0x2e   : > { %p1121_p9 = scmp.lt.s32.totalorder %s1119_s20, %s1114_s27 }
  0x2f   : > { %p1117_p4 = pnand %p1115_p3, %p1088_p7 }
  0x30   : > { %p1122_p11 = por %p1121_p9, %p1120_p8 }
  0x31   : > { %p1118_p6 = pneg %p1117_p4 }
  0x33   : > { %p1123_p12 = pnand %p1122_p11, %p1118_p6 }
  0x35   : > { %1126 = shalt.err (!%p1123_p12)
}
  0x36   : > { %s1127_s14 = scalar_lea.vmem %s1412_s13, 1024  ;;  %s1268_s19 = smov [#allocation8]  }
  0x37   : > { %p1128_p13 = scmp.ne.s32.totalorder %s1412_s13, %s1127_s14  ;;  %s1132_s30 = sshll.u32 %s1268_s19, 4  ;;  %s1133_s30 = int_to_ptr.vmem [resolvable:$false] %s1132_s30 }
  0x38   : > { %s1134_s18 = scalar_lea.vmem %s1133_s30, 2048  ;;  %p1135_p2 = scmp.lt.s32.totalorder %s1412_s13, %s1133_s30 }
  0x39   : > { %p1130_p3 = pnand %p1128_p13, %p1088_p7  ;;  %p1136_p10 = scmp.lt.s32.totalorder %s1134_s18, %s1127_s14 }
  0x3b   : > { %p1131_p4 = pneg %p1130_p3  ;;  %p1137_p0 = por %p1136_p10, %p1135_p2 }
  0x3d   : > { %p1138_p8 = pnand %p1137_p0, %p1131_p4 }
  0x3f   : > { %1141 = shalt.err (!%p1138_p8)
}
  0x40   : > { %1018 = dma.hbm_to_vmem [thread:$0]  (!%p1368_p5), %s1409_s11, 1024, %s1412_s13, %s1374_s23, %s1265_s24, %s1265_s24, %s1266_s25  }
  0x41   : > { %p1615_p7 = scmp.eq.s32.totalorder %s1415_s17, 0  ;;  %p1616_p13 = pneg %p1429_p1 }
  0x42   : > { %s1153_s27 = scalar_lea.vmem %s1433_s21, 256  ;;  %p1161_p11 = scmp.lt.s32.totalorder %s1433_s21, %s1433_s21 }
  0x43   : > { %p1009_p10 = pnand %p1616_p13, %p1615_p7  ;;  %p1154_p2 = scmp.ne.s32.totalorder %s1433_s21, %s1153_s27 }
  0x44   : > { %p1162_p12 = scmp.lt.s32.totalorder %s1153_s27, %s1153_s27 }
  0x45   : > { %p1144_p0 = pneg %p1009_p10 }
  0x46   : > { %p1163_p3 = por %p1162_p12, %p1161_p11 }
  0x47   : > { %p1156_p6 = pnand %p1154_p2, %p1144_p0 }
  0x49   : > { %p1157_p9 = pneg %p1156_p6 }
  0x4b   : > { %p1164_p4 = pnand %p1163_p3, %p1157_p9 }
  0x4d   : > { %1167 = shalt.err (!%p1164_p4)
}
  0x4e   : > { %s1269_s22 = smov 128   ;;  %s1270_s20 = smov 8  }
  0x4f   : > { %1011 = dma.hbm_to_vmem [thread:$0]  (!%p1009_p10), %s1603_s2, 256, %s1433_s21, [#allocation4], %s1269_s22, %s1269_s22, %s1270_s20  }
  0x50   : > { %327 = sbr.rel (%p1429_p1) target bundleno = 969 (0x3c9), region = 48  ;;  %p1617_p5 = scmp.eq.s32.totalorder (!%p1429_p1), %s1415_s17, 0 }
  0x55   : > { %1233 = dma.done.wait (%p1617_p5), [#allocation4], 256   ;;  %p1618_p8 = pmov %p1617_p5 }
  0x56   : > { %s333_s24 = sand.u32 1, %s1415_s17   ;;  %s335_s25 = sand.u32 1, %s1254_s28  }
  0x57   : > { %1235 = vsyncadd (%p1618_p8), [#allocation4], 4294967040  ;;  %s885_s11 = sshll.u32 %s335_s25, 6  ;;  %s334_s13 = scalar_lea.sflag [#allocation7], %s333_s24 }
  0x58   : > { %s1484_s10 = scalar_lea.vmem [#allocation6], %s885_s11  ;;  %p1619_p7 = scmp.ne.s32.totalorder %s1613_s16, 0 }
  0x5a   : > { %1237 = dma.done.wait (%p1619_p7), %s334_s13, 2048  }
  0x5b   : > { %1239 = vsyncadd (%p1619_p7), %s334_s13, 4294965248  ;;  %p385_p1 = scmp.lt.s32.totalorder %s1415_s17, 1  ;;  %s1502_s22 = scalar_lea.vmem [#allocation8], %s885_s11 }
  0x5c   : > { %p1620_p13 = scmp.ne.s32.totalorder %s1415_s17, 0 }
  0x5d   : > { %s1492_s15 = scalar_select %p385_p1, %s1415_s17, 1 }
  0x5e   : > { %395 = sbr.rel (%p1620_p13) target bundleno = 101 (0x65), region = 64 }
  0x5f   : > { %s387_s19 = scalar_lea.vmem %s1605_s4, %s1492_s15  ;;  %s390_s27 = scalar_lea.vmem %s1607_s6, %s1492_s15 }
  0x63   : > { %v396_v0 = vld [vmem:[#allocation3] sm:$0xff]  ;;  %v397_v1 = vld [vmem:[#allocation3 + $0x8] sm:$0xff] }
  0x64   : > { %398 = vst [vmem:[#allocation2] sm:$0xff] %v396_v0  ;;  %399 = vst [vmem:[#allocation2 + $0x8] sm:$0xff] %v397_v1 }
  0x65 PF: > { %v1069_v2 = vld [vmem:[%s1484_s10 + $0x38] sm:$0xff]   ;;  %v1271_v3 = vmov 0.0   ;;  %v1070_v4 = vld [vmem:[%s1484_s10 + $0x30] sm:$0xff]   ;;  %vm1272_vm0 = vmmov 0   ;;  %v1071_v5 = vld [vmem:[%s1484_s10 + $0x28] sm:$0xff]   ;;  %vm517_vm1 = vcmask 130048  }
  0x66   : > { %940 = vmatprep.subr.bf16.mxu0 %v1271_v3  ;;  %960 = vmatprep.subr.bf16.mxu1 %v1271_v3  ;;  %v1072_v6 = vld [vmem:[%s1484_s10 + $0x20] sm:$0xff]   ;;  %v1073_v7 = vld [vmem:[%s1484_s10 + $0x18] sm:$0xff]   ;;  %v1074_v8 = vld [vmem:[%s1484_s10 + $0x10] sm:$0xff]   ;;  %vm686_vm2 = vcmask 1043456   ;;  %vm682_vm3 = vcmask 64512   ;;  %p909_p10 = scmp.ne.s32.totalorder %s1415_s17, 1 }
  0x67   : > { %941 = vmatpush3.bf16.msra.mxu0 %v1069_v2  ;;  %956 = vmatprep.mubr.msk.bf16.mxu0 %vm1272_vm0, %v1271_v3  ;;  %v1075_v9 = vld [vmem:[%s1484_s10 + $0x8] sm:$0xff]   ;;  %v1076_v10 = vld [vmem:[%s1484_s10] sm:$0xff]   ;;  %v1077_v20 = vld [vmem:[%s1502_s22 + $0x38] sm:$0xff]  }
  0x68   : > { %942 = vmatprep.subr.bf16.mxu0 %v1271_v3  ;;  %962 = vmatprep.mubr.msk.bf16.mxu1 %vm1272_vm0, %v1271_v3  ;;  %v508_v19 = vld [vmem:[%s1601_s0] sm:$0xf]  ;;  %v1078_v21 = vld [vmem:[%s1502_s22 + $0x30] sm:$0xff]   ;;  %v1079_v22 = vld [vmem:[%s1502_s22 + $0x28] sm:$0xff]  }
  0x69   : > { %v1080_v23 = vld [vmem:[%s1502_s22 + $0x20] sm:$0xff]   ;;  %v1081_v24 = vld [vmem:[%s1502_s22 + $0x18] sm:$0xff]   ;;  %v1082_v25 = vld [vmem:[%s1502_s22 + $0x10] sm:$0xff]  }
  0x6a   : > { %v1083_v26 = vld [vmem:[%s1502_s22 + $0x8] sm:$0xff]   ;;  %v1084_v27 = vld [vmem:[%s1502_s22] sm:$0xff]  }
  0x6b   : > { %943 = vmatpush3.bf16.msra.mxu0 %v1070_v4  ;;  %v400_v11 = vld [vmem:[#allocation2] sm:$0xff]  ;;  %v401_v12 = vld [vmem:[#allocation2 + $0x8] sm:$0xff] }
  0x6c   : > { %944 = vmatprep.subr.bf16.mxu0 %v1271_v3  ;;  %v402_v13 = vpack.c.bf16 %v401_v12, %v400_v11  ;;  %v896_v28 = vld [vmem:[%s387_s19] ss:$0 sm:$0xff] }
  0x6d   : > { %v1085_v40 = vld [vmem:[%s1602_s1] sm:$0xff]  }
  0x6e   : > { %v906_v43 = vld [vmem:[%s390_s27] ss:$0 sm:$0xff] }
  0x6f   : > { %945 = vmatpush3.bf16.msra.mxu0 %v1071_v5 }
  0x70   : > { %946 = vmatprep.subr.bf16.mxu0 %v1271_v3 }
  0x73   : > { %947 = vmatpush3.bf16.msra.mxu0 %v1072_v6 }
  0x74   : > { %948 = vmatprep.subr.bf16.mxu0 %v1271_v3 }
  0x77   : > { %949 = vmatpush3.bf16.msra.mxu0 %v1073_v7 }
  0x78   : > { %950 = vmatprep.subr.bf16.mxu0 %v1271_v3 }
  0x7b   : > { %951 = vmatpush3.bf16.msra.mxu0 %v1074_v8 }
  0x7c   : > { %952 = vmatprep.subr.bf16.mxu0 %v1271_v3 }
  0x7f   : > { %953 = vmatpush3.bf16.msra.mxu0 %v1075_v9 }
  0x80   : > { %954 = vmatprep.subr.bf16.mxu0 %v1271_v3 }
  0x83   : > { %955 = vmatpush3.bf16.msra.mxu0 %v1076_v10 }
  0x84   : > { %986 = vmatprep.subr.bf16.mxu0 %v1271_v3 }
  0x86   : > { %957 = vmatmul.mubr.bf16.vlgmr.msra.gmra.mxu0 %v402_v13 }
  0x87   : > { %988 = vmatprep.mubr.msk.bf16.mxu0 %vm1272_vm0, %v1271_v3 }
 0x146   : > { %v501_v14 = vpop.f32.mrf.mxu0 }
 0x148   : > { %v958_v15 = vpop.f32.mrf.mxu0 }
 0x14a   : > { %v504_v16 = vpop.f32.mrf.mxu0 }
 0x14b   : > { %v509_v17 = vpack.c.bf16 %v504_v16, %v501_v14 }
 0x14c   : > { %v959_v18 = vpop.f32.mrf.mxu0 }
 0x14d   : > { %961 = vmatpush3.bf16.msra.mxu1 %v509_v17 }
 0x14e   : > { %966 = vmatprep.subr.bf16.mxu1 %v1271_v3 }
 0x150   : > { %963 = vmatmul.mubr.msk.bf16.vlgmr.msra.gmra.mxu1 %vm517_vm1, %v508_v19 }
 0x151   : > { %967 = vmatpush3.bf16.msra.mxu1 %v1077_v20  ;;  %982 = vmatprep.mubr.msk.bf16.mxu1 %vm1272_vm0, %v1271_v3 }
 0x152   : > { %968 = vmatprep.subr.bf16.mxu1 %v1271_v3 }
 0x155   : > { %969 = vmatpush3.bf16.msra.mxu1 %v1078_v21 }
 0x156   : > { %970 = vmatprep.subr.bf16.mxu1 %v1271_v3 }
 0x159   : > { %971 = vmatpush3.bf16.msra.mxu1 %v1079_v22 }
 0x15a   : > { %972 = vmatprep.subr.bf16.mxu1 %v1271_v3 }
 0x15d   : > { %973 = vmatpush3.bf16.msra.mxu1 %v1080_v23 }
 0x15e   : > { %974 = vmatprep.subr.bf16.mxu1 %v1271_v3 }
 0x161   : > { %975 = vmatpush3.bf16.msra.mxu1 %v1081_v24 }
 0x162   : > { %976 = vmatprep.subr.bf16.mxu1 %v1271_v3 }
 0x165   : > { %977 = vmatpush3.bf16.msra.mxu1 %v1082_v25 }
 0x166   : > { %978 = vmatprep.subr.bf16.mxu1 %v1271_v3 }
 0x169   : > { %979 = vmatpush3.bf16.msra.mxu1 %v1083_v26 }
 0x16a   : > { %980 = vmatprep.subr.bf16.mxu1 %v1271_v3 }
 0x16d   : > { %981 = vmatpush3.bf16.msra.mxu1 %v1084_v27 }
 0x210   : > { %v555_v29 = vpop.f32.mrf.mxu1 }
 0x211   : > { %v556_v30 = vadd.f32 %v896_v28, %v555_v29 }
 0x212   : > { %v964_v31 = vpop.f32.mrf.mxu1 }
 0x213   : > { %v561_v32 = vmax.f32 %v556_v30, 0.0 }
 0x214   : > { %v558_v33 = vpop.f32.mrf.mxu1 }
 0x215   : > { %v562_v34 = vpack.c.bf16 %v561_v32, %v561_v32 }
 0x216   : > { %v965_v35 = vpop.f32.mrf.mxu1 }
 0x217   : > { %983 = vmatmul.mubr.bf16.vlgmr.msra.gmra.mxu1 %v562_v34 }
 0x2d7   : > { %v661_v36 = vpop.f32.mrf.mxu1 }
 0x2d8   : > { %v669_v37 = vpack.c.bf16 %v661_v36, %v661_v36 }
 0x2d9   : > { %v984_v38 = vpop.f32.mrf.mxu1 }
 0x2da   : > { %v688_v39 = vsel %vm686_vm2, %v669_v37, 0 }
 0x2db   : > { %v664_v41 = vpop.f32.mrf.mxu1  ;;  %987 = vmatpush3.bf16.msra.mxu0 %v688_v39 }
 0x2dd   : > { %v985_v42 = vpop.f32.mrf.mxu1 }
 0x2de   : > { %989 = vmatmul.mubr.msk.bf16.vlgmr.msra.gmra.mxu0 %vm682_vm3, %v1085_v40 }
 0x39e   : > { %v724_v44 = vpop.f32.mrf.mxu0 }
 0x39f   : > { %v725_v45 = vadd.f32 %v906_v43, %v724_v44 }
 0x3a0   : > { %v990_v46 = vpop.f32.mrf.mxu0 }
 0x3a1   : > { %v731_v47 = vmax.f32 %v725_v45, 0.0 }
 0x3a2   : > { %v727_v48 = vpop.f32.mrf.mxu0 }
 0x3a3   : > { %733 = vst [vmem:[#allocation2] sm:$0xff] %v731_v47  ;;  %v728_v49 = vadd.f32 %v906_v43, %v727_v48  ;;  %738 = sbr.rel (%p909_p10) target bundleno = 938 (0x3aa), region = 68 }
 0x3a4   : > { %v991_v50 = vpop.f32.mrf.mxu0 }
 0x3a5   : > { %v732_v51 = vmax.f32 %v728_v49, 0.0 }
 0x3a7   : > { %734 = vst [vmem:[#allocation2 + $0x8] sm:$0xff] %v732_v51 }
 0x3a8   : > { %739 = vst [vmem:[#allocation9] sm:$0xff] %v731_v47  ;;  %740 = vst [vmem:[#allocation9 + $0x8] sm:$0xff] %v732_v51 }
 0x3a9   : > { %741 = vst [vmem:[#allocation10] sm:$0xff] %v561_v32 }
 0x3aa PF: > { %p1022_p0 = scmp.eq.s32.totalorder %s1415_s17, 1  ;;  %s1273_s10 = smov [#allocation9]  }
 0x3ab   : > { %s748_s15 = sshll.u32 %s1273_s10, 4  ;;  %s749_s15 = int_to_ptr.vmem [resolvable:$true] %s748_s15 }
 0x3ac   : > { %s1168_s21 = scalar_lea.vmem %s749_s15, 256  ;;  %p1175_p11 = scmp.lt.s32.totalorder %s749_s15, %s749_s15 }
 0x3ad   : > { %p1169_p2 = scmp.ne.s32.totalorder %s749_s15, %s1168_s21  ;;  %p1176_p12 = scmp.lt.s32.totalorder %s1168_s21, %s1168_s21 }
 0x3af   : > { %p1170_p6 = pnand %p1169_p2, %p1022_p0  ;;  %p1177_p3 = por %p1176_p12, %p1175_p11 }
 0x3b1   : > { %p1171_p9 = pneg %p1170_p6 }
 0x3b3   : > { %p1178_p4 = pnand %p1177_p3, %p1171_p9 }
 0x3b5   : > { %1181 = shalt.err (!%p1178_p4)
}
 0x3b6   : > { %s1274_s14 = smov 128   ;;  %s1275_s19 = smov 8  }
 0x3b7   : > { %1001 = dma.vmem_to_hbm [thread:$0]  (%p1022_p0), %s749_s15, 256, %s1608_s7, [#allocation5], %s1274_s14, %s1274_s14, %s1275_s19  }
 0x3b8   : > { %s1276_s27 = smov [#allocation10]  }
 0x3b9   : > { %s762_s22 = sshll.u32 %s1276_s27, 4  ;;  %s763_s22 = int_to_ptr.vmem [resolvable:$true] %s762_s22 }
 0x3ba   : > { %s1192_s16 = scalar_lea.vmem %s763_s22, 128  ;;  %p1199_p1 = scmp.lt.s32.totalorder %s763_s22, %s763_s22 }
 0x3bb   : > { %p1193_p5 = scmp.ne.s32.totalorder %s763_s22, %s1192_s16  ;;  %p1200_p13 = scmp.lt.s32.totalorder %s1192_s16, %s1192_s16 }
 0x3bd   : > { %p1194_p8 = pnand %p1193_p5, %p1022_p0  ;;  %p1201_p10 = por %p1200_p13, %p1199_p1 }
 0x3bf   : > { %p1195_p7 = pneg %p1194_p8 }
 0x3c1   : > { %p1202_p2 = pnand %p1201_p10, %p1195_p7 }
 0x3c3   : > { %1205 = shalt.err (!%p1202_p2)
}
 0x3c4   : > { %1003 = dma.vmem_to_hbm [thread:$0]  (%p1022_p0), %s763_s22, 128, %s1609_s8, [#allocation11]  }
 0x3c5   : > { %1241 = dma.done.wait (%p1022_p0), [#allocation5], 256  }
 0x3c6   : > { %1243 = vsyncadd (%p1022_p0), [#allocation5], 4294967040 }
 0x3c7   : > { %1245 = dma.done.wait (%p1022_p0), [#allocation11], 128  }
 0x3c8   : > { %1247 = vsyncadd (%p1022_p0), [#allocation11], 4294967168 }
 0x3c9 PF: > { %p22_p6 = scmp.ge.s32.totalorder %s1343_s9, 4   ;;  %s1621_s27 = smov %s1254_s28 }
 0x3ca   : > { %s1622_s28 = smov %s1258_s29  ;;  %s1623_s29 = smov %s1353_s12 }
 0x3cb   : > { %s1624_s30 = smov %s1343_s9  ;;  %24 = sbr.rel (!%p22_p6) target bundleno = 6 (0x6), region = 123 }
 0x3d0   :  { %779 = vsyncpa [#allocation4], 1 }
 0x3d1   :  { %781 = vsyncpa [#allocation4 + $0x1], 1 }
 0x3d2   :  { %782 = vsyncpa [#allocation7], 1 }
 0x3d3   :  { %784 = vsyncpa [#allocation7 + $0x1], 1 }
 0x3d4   :  { %785 = vsyncpa [#allocation5], 1 }
 0x3d5   :  { %787 = vsyncpa [#allocation5 + $0x1], 1 }
 0x3d6   :  { %788 = vsyncpa [#allocation11], 1 }

</bundles_post_ra>
